<compile_context>
chip_gen: v7x
topology: tpu7x:2x2x1
jax: 0.10.0
libtpu: 0.0.40
codegen_flags: <defaults>
</compile_context>

<pallas_src>
import functools
import math

import jax
import jax.numpy as jnp
from jax import lax
from jax.experimental import pallas as pl
from jax.experimental.pallas import tpu as pltpu


def _pair(v):
    if isinstance(v, (tuple, list)):
        assert len(v) == 2
        return tuple(v)
    return (v, v)


def _cdiv(a, b):
    return -(-a // b)


def _round_up(a, b):
    return _cdiv(a, b) * b


def _tpu_vmem_and_cores():
    """Best-effort (vmem_capacity_bytes, num_tensorcores) for the local chip."""
    vmem_cap = 64 * 1024 * 1024  # conservative default (v7x per-TC VMEM)
    num_tc = 1                   # v5e/v6e are single-TensorCore
    try:
        info = pltpu.get_tpu_info()
        cap = getattr(info, "vmem_capacity_bytes", None)
        if isinstance(cap, int) and (16 << 20) <= cap <= (1 << 30):
            vmem_cap = cap
        for name in ("num_tensorcores", "tensorcore_count", "cores_per_chip"):
            v = getattr(info, name, None)
            if isinstance(v, int) and 1 <= v <= 8:
                num_tc = v
                break
    except Exception:  # interpret mode / non-TPU backend / older jax
        pass
    return vmem_cap, num_tc


def _pick_block_channels(nc, per_channel_bytes, budget_bytes, num_tc):
    """Largest channel-slab that fits the double-buffered VMEM budget."""
    cap = max(1, budget_bytes // max(1, per_channel_bytes))
    cb = min(nc, cap)
    if num_tc > 1 and nc >= 2:
        # Even split across TensorCores ("parallel" grid axis): step count a
        # multiple of num_tc and, when cheaply possible, no ragged tail block.
        steps = _round_up(_cdiv(nc, cb), num_tc)
        for s in range(steps, steps + 4 * num_tc + 1, num_tc):
            if nc % s == 0:
                steps = s
                break
        cb = _cdiv(nc, steps)
    return max(1, cb)


def _pad_hw_kernel(x_ref, o_ref, *, pad_top, pad_left, H, W):
    """General NCHW path: (cb, H, W) -> (cb, H_out, W_out).

    Dense whole-tile zero splat + exactly one interior copy (no per-strip
    1-2-lane masked stores)."""
    o_ref[...] = jnp.zeros(o_ref.shape, o_ref.dtype)
    o_ref[:, pl.ds(pad_top, H), pl.ds(pad_left, W)] = x_ref[...]


def _pad_rows_kernel(x_ref, o_ref, *, lead_zeros, L):
    """Lane-dense path when the last (W) dim needs no padding.

    The per-plane image is flattened to H*W lanes; only two contiguous lane
    ranges (leading / trailing padded rows) are zero-filled."""
    cb = o_ref.shape[0]
    L_out = o_ref.shape[-1]
    tail_zeros = L_out - lead_zeros - L
    if lead_zeros > 0:
        o_ref[:, pl.ds(0, lead_zeros)] = jnp.zeros((cb, lead_zeros), o_ref.dtype)
    if tail_zeros > 0:
        o_ref[:, pl.ds(lead_zeros + L, tail_zeros)] = jnp.zeros(
            (cb, tail_zeros), o_ref.dtype)
    o_ref[:, pl.ds(lead_zeros, L)] = x_ref[...]


def same_pad_2d(x, kernel_size, stride, *, max_block_channels=None,
                small_input_fallback=False):
    """JAX/Pallas equivalent of SamePad2d.forward for NCHW input `x`."""
    kernel_size = _pair(kernel_size)
    stride = _pair(stride)
    N, C, H, W = x.shape

    # Reproduce the PyTorch module's arithmetic exactly (including its naming
    # quirk: "width" quantities come from size(2)=H and feed pad_left/right,
    # which F.pad applies to the LAST dim (W); "height" quantities come from
    # size(3)=W and feed pad_top/bottom, which F.pad applies to dim 2 (H)).
    in_width = H
    in_height = W
    out_width = math.ceil(float(in_width) / float(stride[0]))
    out_height = math.ceil(float(in_height) / float(stride[1]))
    pad_along_width = (out_width - 1) * stride[0] + kernel_size[0] - in_width
    pad_along_height = (out_height - 1) * stride[1] + kernel_size[1] - in_height
    pad_left = int(math.floor(pad_along_width / 2))
    pad_top = int(math.floor(pad_along_height / 2))
    pad_right = int(pad_along_width - pad_left)
    pad_bottom = int(pad_along_height - pad_top)

    if pad_left == pad_right == pad_top == pad_bottom == 0:
        return x

    if min(pad_left, pad_right, pad_top, pad_bottom) < 0:
        # F.pad with negative pads crops; lax.pad handles negative edge pads,
        # so this rare case keeps PyTorch semantics (non-Pallas path).
        cfg = ((0, 0, 0), (0, 0, 0),
               (pad_top, pad_bottom, 0), (pad_left, pad_right, 0))
        return lax.pad(x, jnp.array(0, x.dtype), cfg)

    H_out = H + pad_top + pad_bottom
    W_out = W + pad_left + pad_right
    nc = N * C
    itemsize = jnp.dtype(x.dtype).itemsize

    if small_input_fallback and x.size * itemsize < (1 << 20):
        # Launch + single-step overhead dominates for tiny tensors.  Off by
        # default so callers always exercise the Pallas path.
        # TODO(synk): best is to fuse the pad into the consuming conv kernel
        # and skip this extra HBM round trip entirely.
        return jnp.pad(x, ((0, 0), (0, 0),
                           (pad_top, pad_bottom), (pad_left, pad_right)))

    vmem_cap, num_tc = _tpu_vmem_and_cores()
    # Double-buffered (input + output) block budget: ~44% of per-core VMEM,
    # capped at 56 MiB -> ~56 MiB on v5e/v6e (128 MiB), ~28 MiB on v7x (64 MiB/TC).
    budget = max(4 << 20, min(56 << 20, int(0.44 * vmem_cap)))

    sub = 8 * max(1, 4 // itemsize)  # sublane packing: f32->8, bf16->16, int8->32
    lane_dense = (pad_left == 0 and pad_right == 0)

    if lane_dense:
        L = H * W
        L_out = H_out * W_out  # W_out == W here
        # VMEM footprint per channel with (sublane,128) tile padding, x2 for
        # double-buffering.
        per_channel = 2 * (_round_up(L, 128) + _round_up(L_out, 128)) * itemsize
    else:
        per_channel = 2 * (_round_up(H, sub) * _round_up(W, 128) +
                           _round_up(H_out, sub) * _round_up(W_out, 128)) * itemsize

    cb = _pick_block_channels(nc, per_channel, budget, num_tc)
    if max_block_channels is not None:
        cb = max(1, min(cb, int(max_block_channels)))
    if lane_dense and cb < nc and cb % sub != 0:
        # 2-D blocks put cb on the sublane axis: it must be a multiple of the
        # sublane pack or span the whole array.
        cb = min(nc, _round_up(cb, sub))

    num_blocks = _cdiv(nc, cb)
    vmem_limit = int(min(vmem_cap, max(32 << 20, cb * per_channel + (8 << 20))))

    cost = pl.CostEstimate(
        flops=0, transcendentals=0,
        bytes_accessed=(nc * H * W + nc * H_out * W_out) * itemsize)
    cparams = pltpu.CompilerParams(
        dimension_semantics=("parallel",),
        vmem_limit_bytes=vmem_limit)

    if lane_dense:
        kern = functools.partial(_pad_rows_kernel, lead_zeros=pad_top * W, L=L)
        x_flat = x.reshape(nc, L)
        out_flat = pl.pallas_call(
            kern,
            out_shape=jax.ShapeDtypeStruct((nc, L_out), x.dtype),
            grid_spec=pltpu.PrefetchScalarGridSpec(
                num_scalar_prefetch=0,
                grid=(num_blocks,),
                in_specs=[pl.BlockSpec((cb, L), lambda i: (i, 0))],
                out_specs=pl.BlockSpec((cb, L_out), lambda i: (i, 0)),
            ),
            compiler_params=cparams,
            cost_estimate=cost,
        )(x_flat)
        return out_flat.reshape(N, C, H_out, W_out)

    kern = functools.partial(_pad_hw_kernel,
                             pad_top=pad_top, pad_left=pad_left, H=H, W=W)
    x_flat = x.reshape(nc, H, W)
    out_flat = pl.pallas_call(
        kern,
        out_shape=jax.ShapeDtypeStruct((nc, H_out, W_out), x.dtype),
        grid_spec=pltpu.PrefetchScalarGridSpec(
            num_scalar_prefetch=0,
            grid=(num_blocks,),
            in_specs=[pl.BlockSpec((cb, H, W), lambda i: (i, 0, 0))],
            out_specs=pl.BlockSpec((cb, H_out, W_out), lambda i: (i, 0, 0)),
        ),
        compiler_params=cparams,
        cost_estimate=cost,
    )(x_flat)
    return out_flat.reshape(N, C, H_out, W_out)


if __name__ == "__main__":
    key = jax.random.PRNGKey(0)
    x = jax.random.normal(key, (2, 4, 16, 16), dtype=jnp.float32)

    # 1) Standard 3x3 / stride 1: pad 1 on every side (general NCHW kernel).
    out = jax.block_until_ready(same_pad_2d(x, 3, 1))
    ref = jnp.pad(x, ((0, 0), (0, 0), (1, 1), (1, 1)))
    assert out.shape == ref.shape, (out.shape, ref.shape)
    assert jnp.array_equal(out, ref), "mismatch (3x3, stride 1)"

    # 2) Uneven pad: kernel 4 -> 1 top/left, 2 bottom/right.
    out = jax.block_until_ready(same_pad_2d(x, 4, 1))
    ref = jnp.pad(x, ((0, 0), (0, 0), (1, 2), (1, 2)))
    assert out.shape == ref.shape, (out.shape, ref.shape)
    assert jnp.array_equal(out, ref), "mismatch (4x4, stride 1)"

    # 3) Ragged tail / multi-step grid (nc=8, cb=3 -> blocks of 3,3,2).
    out = jax.block_until_ready(same_pad_2d(x, 3, 1, max_block_channels=3))
    ref = jnp.pad(x, ((0, 0), (0, 0), (1, 1), (1, 1)))
    assert out.shape == ref.shape, (out.shape, ref.shape)
    assert jnp.array_equal(out, ref), "mismatch (ragged tail blocks)"

    # 4) Lane-dense fast path: kernel (1, 3) pads only dim 2 (H).
    out = jax.block_until_ready(same_pad_2d(x, (1, 3), 1))
    ref = jnp.pad(x, ((0, 0), (0, 0), (1, 1), (0, 0)))
    assert out.shape == ref.shape, (out.shape, ref.shape)
    assert jnp.array_equal(out, ref), "mismatch (lane-dense fast path)"

    # 5) Negative "SAME" pad (crop) falls back to lax.pad (non-Pallas path).
    out = jax.block_until_ready(same_pad_2d(x, 1, 2))
    ref = x[:, :, 1:, 1:]
    assert out.shape == ref.shape, (out.shape, ref.shape)
    assert jnp.array_equal(out, ref), "mismatch (negative pad / crop)"

    print("KERNEL_OK")
</pallas_src>

<mosaic_0001>
module attributes {stable_mosaic.version = 11 : i64} {
  func.func @_pad_hw_kernel(%arg0: i32, %arg1: memref<8x16x16xf32, #tpu.memory_space<vmem>>, %arg2: memref<8x18x18xf32, #tpu.memory_space<vmem>>) attributes {dimension_semantics = [#tpu.dimension_semantics<parallel>], iteration_bounds = array<i64: 1>, scalar_prefetch = 0 : i64, scratch_operands = 0 : i64, tpu.core_type = #tpu.core_type<tc>, window_params = [{transform_indices = @transform_0, window_bounds = array<i64: 8, 16, 16>}, {transform_indices = @transform_1, window_bounds = array<i64: 8, 18, 18>}]} {
    %cst = arith.constant 0.000000e+00 : f32
    %0 = vector.broadcast %cst : f32 to vector<8x18x18xf32>
    %c0 = arith.constant 0 : index
    %c0_0 = arith.constant 0 : index
    %c0_1 = arith.constant 0 : index
    %1 = vector.load %arg2[%c0, %c0_0, %c0_1] : memref<8x18x18xf32, #tpu.memory_space<vmem>>, vector<8x18x18xf32>
    tpu.vector_store %arg2[%c0, %c0_0, %c0_1], %0 {strides = array<i32>} : memref<8x18x18xf32, #tpu.memory_space<vmem>>, vector<8x18x18xf32>,
    %c0_2 = arith.constant 0 : index
    %c0_3 = arith.constant 0 : index
    %c0_4 = arith.constant 0 : index
    %2 = vector.load %arg1[%c0_2, %c0_3, %c0_4] : memref<8x16x16xf32, #tpu.memory_space<vmem>>, vector<8x16x16xf32>
    %c0_5 = arith.constant 0 : index
    %c1 = arith.constant 1 : index
    %c1_6 = arith.constant 1 : index
    %3 = vector.load %arg2[%c0_5, %c1, %c1_6] : memref<8x18x18xf32, #tpu.memory_space<vmem>>, vector<8x16x16xf32>
    tpu.vector_store %arg2[%c0_5, %c1, %c1_6], %2 {strides = array<i32>} : memref<8x18x18xf32, #tpu.memory_space<vmem>>, vector<8x16x16xf32>,
    return
  }
  func.func @transform_0(%arg0: i32) -> (i32, i32, i32) {
    %c0_i32 = arith.constant 0 : i32
    %c0_i32_0 = arith.constant 0 : i32
    %c0_i32_1 = arith.constant 0 : i32
    return %arg0, %c0_i32, %c0_i32_0 : i32, i32, i32
  }
  func.func @transform_1(%arg0: i32) -> (i32, i32, i32) {
    %c0_i32 = arith.constant 0 : i32
    %c0_i32_0 = arith.constant 0 : i32
    %c0_i32_1 = arith.constant 0 : i32
    return %arg0, %c0_i32, %c0_i32_0 : i32, i32, i32
  }
}

</mosaic_0001>

<bundles_post_ra>
// kernel: tpu_custom_call.1
= control target key start
LH: loop header
LB: loop body
LE: loop exit
PB: predicated region body
PF: predicated region fallthrough
CT: control target
= control target key end

     0   :  { %6 = vsyncpa [#allocation3], 0  ;;  %s179_s6 = smov [#allocation2]   ;;  %s358_s0 = inlined_call_operand.hbm [shape: f32[8,16,16], index: 0, kind: input, shape index: {}]   ;;  %s359_s1 = inlined_call_operand.vmem [shape: f32[8,18,18], index: 1, kind: output, shape index: {}]  }
   0x1   :  { %s12_s7 = sshll.u32 %s179_s6, 4  ;;  %s155_s10 = scalar_lea.hbm %s358_s0, 2048  ;;  %s13_s7 = int_to_ptr.vmem [resolvable:$true] %s12_s7 }
   0x2   :  { %p156_p0 = scmp.ne.s32.totalorder %s358_s0, %s155_s10  ;;  %p159_p1 = scmp.lt.u32.totalorder %s155_s10, %s358_s0 }
   0x4   :  { %p161_p2 = pnand %p159_p1, %p156_p0 }
   0x6   :  { %164 = shalt.err (!%p161_p2)
}
   0x7   :  { %s165_s15 = scalar_lea.vmem %s13_s7, 2048  ;;  %p170_p4 = scmp.lt.s32.totalorder %s13_s7, %s13_s7 }
   0x8   :  { %p166_p3 = scmp.ne.s32.totalorder %s13_s7, %s165_s15  ;;  %p171_p5 = scmp.lt.s32.totalorder %s165_s15, %s165_s15 }
   0xa   :  { %p172_p6 = por %p171_p5, %p170_p4 }
   0xc   :  { %p173_p7 = pnand %p172_p6, %p166_p3 }
   0xe   :  { %176 = shalt.err (!%p173_p7)
}
   0xf   :  { %s180_s16 = smov 128   ;;  %s181_s17 = smov 8  }
  0x10   :  { %18 = dma.hbm_to_vmem [thread:$0]  %s358_s0, 2048, %s13_s7, [#allocation3], %s180_s16, %s180_s16, %s181_s17  }
  0x11   :  { %177 = dma.done.wait [#allocation3], 2048  }
  0x12   :  { %178 = vsyncadd [#allocation3], 4294965248  ;;  %vm22_vm0 = vcmask 146432   ;;  %v182_v0 = vmov 0.0   ;;  %vm25_vm1 = vcmask 140288   ;;  %v50_v1 = vld [vmem:[#allocation2 + $0x10] sm:$0xff] }
  0x13   :  { %27 = vst.msk [vmem:[%s359_s1 + $0x18] sm:$0xff] %vm22_vm0, %v182_v0  ;;  %28 = vst.msk [vmem:[%s359_s1 + $0x20] sm:$0xff] %vm22_vm0, %v182_v0  ;;  %v48_v2 = vld [vmem:[#allocation2] sm:$0xff]  ;;  %s183_s8 = smov 1   ;;  %v51_v3 = vld [vmem:[#allocation2 + $0x18] sm:$0xff]  ;;  %vm128_vm2 = vcmask 138248  }
  0x14   :  { %23 = vst.msk [vmem:[%s359_s1] sm:$0xff] %vm22_vm0, %v182_v0  ;;  %24 = vst.msk [vmem:[%s359_s1 + $0x8] sm:$0xff] %vm22_vm0, %v182_v0  ;;  %84 = vrot.lane.b32.xlu1 %v50_v1, %s183_s8  ;;  %80 = vrot.lane.b32.xlu0 %v48_v2, %s183_s8  ;;  %v49_v4 = vld [vmem:[#allocation2 + $0x8] sm:$0xff]  ;;  %v52_v6 = vld [vmem:[#allocation2 + $0x20] sm:$0xff] }
  0x15   :  { %30 = vst.msk [vmem:[%s359_s1 + $0x30] sm:$0xff] %vm22_vm0, %v182_v0  ;;  %31 = vst.msk [vmem:[%s359_s1 + $0x38] sm:$0xff] %vm22_vm0, %v182_v0  ;;  %v53_v5 = vld [vmem:[#allocation2 + $0x28] sm:$0xff]  ;;  %v55_v7 = vld [vmem:[#allocation2 + $0x38] sm:$0xff] }
  0x16   :  { %33 = vst.msk [vmem:[%s359_s1 + $0x48] sm:$0xff] %vm22_vm0, %v182_v0  ;;  %34 = vst.msk [vmem:[%s359_s1 + $0x50] sm:$0xff] %vm22_vm0, %v182_v0  ;;  %v54_v8 = vld [vmem:[#allocation2 + $0x30] sm:$0xff]  ;;  %v57_v9 = vld [vmem:[#allocation2 + $0x48] sm:$0xff] }
  0x17   :  { %36 = vst.msk [vmem:[%s359_s1 + $0x60] sm:$0xff] %vm22_vm0, %v182_v0  ;;  %37 = vst.msk [vmem:[%s359_s1 + $0x68] sm:$0xff] %vm22_vm0, %v182_v0  ;;  %v56_v10 = vld [vmem:[#allocation2 + $0x40] sm:$0xff]  ;;  %v59_v11 = vld [vmem:[#allocation2 + $0x58] sm:$0xff] }
  0x18   :  { %39 = vst.msk [vmem:[%s359_s1 + $0x78] sm:$0xff] %vm22_vm0, %v182_v0  ;;  %40 = vst.msk [vmem:[%s359_s1 + $0x80] sm:$0xff] %vm22_vm0, %v182_v0  ;;  %86 = vrot.lane.b32.xlu1 %v51_v3, %s183_s8  ;;  %82 = vrot.lane.b32.xlu0 %v49_v4, %s183_s8  ;;  %v58_v12 = vld [vmem:[#allocation2 + $0x50] sm:$0xff]  ;;  %v61_v13 = vld [vmem:[#allocation2 + $0x68] sm:$0xff] }
  0x19   :  { %42 = vst.msk [vmem:[%s359_s1 + $0x90] sm:$0xff] %vm22_vm0, %v182_v0  ;;  %43 = vst.msk [vmem:[%s359_s1 + $0x98] sm:$0xff] %vm22_vm0, %v182_v0  ;;  %v60_v14 = vld [vmem:[#allocation2 + $0x60] sm:$0xff]  ;;  %v63_v15 = vld [vmem:[#allocation2 + $0x78] sm:$0xff] }
  0x1a   :  { %45 = vst.msk [vmem:[%s359_s1 + $0xa8] sm:$0xff] %vm22_vm0, %v182_v0  ;;  %46 = vst.msk [vmem:[%s359_s1 + $0xb0] sm:$0xff] %vm22_vm0, %v182_v0  ;;  %v62_v16 = vld [vmem:[#allocation2 + $0x70] sm:$0xff] }
  0x1b   :  { %29 = vst.msk [vmem:[%s359_s1 + $0x28] sm:$0x3] %vm25_vm1, %v182_v0  ;;  %26 = vst.msk [vmem:[%s359_s1 + $0x10] sm:$0x3] %vm25_vm1, %v182_v0 }
  0x1c   :  { %32 = vst.msk [vmem:[%s359_s1 + $0x40] sm:$0x3] %vm25_vm1, %v182_v0  ;;  %35 = vst.msk [vmem:[%s359_s1 + $0x58] sm:$0x3] %vm25_vm1, %v182_v0  ;;  %90 = vrot.lane.b32.xlu1 %v53_v5, %s183_s8  ;;  %88 = vrot.lane.b32.xlu0 %v52_v6, %s183_s8 }
  0x1d   :  { %38 = vst.msk [vmem:[%s359_s1 + $0x70] sm:$0x3] %vm25_vm1, %v182_v0  ;;  %41 = vst.msk [vmem:[%s359_s1 + $0x88] sm:$0x3] %vm25_vm1, %v182_v0 }
  0x1e   :  { %44 = vst.msk [vmem:[%s359_s1 + $0xa0] sm:$0x3] %vm25_vm1, %v182_v0  ;;  %47 = vst.msk [vmem:[%s359_s1 + $0xb8] sm:$0x3] %vm25_vm1, %v182_v0 }
  0x20   :  { %94 = vrot.lane.b32.xlu1 %v55_v7, %s183_s8  ;;  %92 = vrot.lane.b32.xlu0 %v54_v8, %s183_s8 }
  0x24   :  { %98 = vrot.lane.b32.xlu1 %v57_v9, %s183_s8  ;;  %96 = vrot.lane.b32.xlu0 %v56_v10, %s183_s8 }
  0x28   :  { %102 = vrot.lane.b32.xlu1 %v59_v11, %s183_s8  ;;  %100 = vrot.lane.b32.xlu0 %v58_v12, %s183_s8 }
  0x2c   :  { %106 = vrot.lane.b32.xlu1 %v61_v13, %s183_s8  ;;  %104 = vrot.lane.b32.xlu0 %v60_v14, %s183_s8 }
  0x30   :  { %110 = vrot.lane.b32.xlu1 %v63_v15, %s183_s8  ;;  %108 = vrot.lane.b32.xlu0 %v62_v16, %s183_s8 }
  0x86   :  { %v85_v17 = vpop.permute.xlu1 %84  ;;  %v81_v18 = vpop.permute.xlu0 %80 }
  0x87   :  { %131 = vst.msk [vmem:[%s359_s1 + $0x19] sm:$0xff] %vm128_vm2, %v85_v17  ;;  %129 = vst.msk [vmem:[%s359_s1 + $0x1] sm:$0xff] %vm128_vm2, %v81_v18 }
  0x8a   :  { %v87_v19 = vpop.permute.xlu1 %86  ;;  %v83_v20 = vpop.permute.xlu0 %82 }
  0x8b   :  { %132 = vst.msk [vmem:[%s359_s1 + $0x21] sm:$0xff] %vm128_vm2, %v87_v19  ;;  %130 = vst.msk [vmem:[%s359_s1 + $0x9] sm:$0xff] %vm128_vm2, %v83_v20 }
  0x8e   :  { %v91_v21 = vpop.permute.xlu1 %90  ;;  %v89_v22 = vpop.permute.xlu0 %88 }
  0x8f   :  { %134 = vst.msk [vmem:[%s359_s1 + $0x39] sm:$0xff] %vm128_vm2, %v91_v21  ;;  %133 = vst.msk [vmem:[%s359_s1 + $0x31] sm:$0xff] %vm128_vm2, %v89_v22 }
  0x92   :  { %v95_v23 = vpop.permute.xlu1 %94  ;;  %v93_v24 = vpop.permute.xlu0 %92 }
  0x93   :  { %136 = vst.msk [vmem:[%s359_s1 + $0x51] sm:$0xff] %vm128_vm2, %v95_v23  ;;  %135 = vst.msk [vmem:[%s359_s1 + $0x49] sm:$0xff] %vm128_vm2, %v93_v24 }
  0x96   :  { %v99_v25 = vpop.permute.xlu1 %98  ;;  %v97_v26 = vpop.permute.xlu0 %96 }
  0x97   :  { %138 = vst.msk [vmem:[%s359_s1 + $0x69] sm:$0xff] %vm128_vm2, %v99_v25  ;;  %137 = vst.msk [vmem:[%s359_s1 + $0x61] sm:$0xff] %vm128_vm2, %v97_v26 }
  0x9a   :  { %v103_v27 = vpop.permute.xlu1 %102  ;;  %v101_v28 = vpop.permute.xlu0 %100 }
  0x9b   :  { %140 = vst.msk [vmem:[%s359_s1 + $0x81] sm:$0xff] %vm128_vm2, %v103_v27  ;;  %139 = vst.msk [vmem:[%s359_s1 + $0x79] sm:$0xff] %vm128_vm2, %v101_v28 }
  0x9e   :  { %v107_v29 = vpop.permute.xlu1 %106  ;;  %v105_v30 = vpop.permute.xlu0 %104 }
  0x9f   :  { %142 = vst.msk [vmem:[%s359_s1 + $0x99] sm:$0xff] %vm128_vm2, %v107_v29  ;;  %141 = vst.msk [vmem:[%s359_s1 + $0x91] sm:$0xff] %vm128_vm2, %v105_v30 }
  0xa2   :  { %v111_v31 = vpop.permute.xlu1 %110  ;;  %v109_v32 = vpop.permute.xlu0 %108 }
  0xa3   :  { %144 = vst.msk [vmem:[%s359_s1 + $0xb1] sm:$0xff] %vm128_vm2, %v111_v31  ;;  %143 = vst.msk [vmem:[%s359_s1 + $0xa9] sm:$0xff] %vm128_vm2, %v109_v32 }
  0xa4   :  { %149 = vsyncpa [#allocation3], 1 }

</bundles_post_ra>
